<compile_context>
chip_gen: v7x
topology: tpu7x:2x2x1
jax: 0.10.0
libtpu: 0.0.40
codegen_flags: <defaults>
</compile_context>

<pallas_src>
import jax
import jax.numpy as jnp
from jax.experimental import pallas as pl
from jax.experimental.pallas import tpu as pltpu


# ------------------------------ fused kernel -------------------------------

def _pnet_fused_kernel(x_ref, a1_ref, b1_ref, s_ref, p_ref,
                       a2_ref, b2_ref, a3_ref, b3_ref, ah_ref, bh_ref,
                       o_ref):
    f32 = jnp.float32

    def conv(x2d, a_ref, b_ref):
        # x2d: (H, W*Cin)  a_ref: (kh, W*Cin, Wo*Cout)  b_ref: (1, Wo*Cout)
        kh = a_ref.shape[0]
        ho = x2d.shape[0] - kh + 1
        acc = b_ref[...]                                   # (1, Wo*Cout) -> bcast
        for i in range(kh):                                # static unroll, kh<=3
            acc = acc + jnp.dot(x2d[i:i + ho, :], a_ref[i],
                                preferred_element_type=f32)
        return acc                                         # (Ho, Wo*Cout)

    x = x_ref[0]                                           # (H, W*Cin) = (16, 48)

    # conv1 (3x3, 3->10)
    y = conv(x, a1_ref, b1_ref)                            # (14, 14*10)

    # 2x2 / stride-2 max-pool as selection matmuls + elementwise max.
    v = jnp.maximum(jnp.dot(s_ref[0], y, preferred_element_type=f32),
                    jnp.dot(s_ref[1], y, preferred_element_type=f32))  # (7, 140)
    y1 = jnp.maximum(jnp.dot(v, p_ref[0], preferred_element_type=f32),
                     jnp.dot(v, p_ref[1], preferred_element_type=f32))  # (7, 70)

    y2 = conv(y1, a2_ref, b2_ref)                          # (5, 5*16)
    y3 = conv(y2, a3_ref, b3_ref)                          # (3, 3*32)
    out = conv(y3, ah_ref, bh_ref)                         # fused heads: (3, 3*5)

    o_ref[0] = out.astype(o_ref.dtype)


# -------------------- one-time weight relayout (hoisted) --------------------

def _expand_conv(w_oihw, w_in):
    """Torch OIHW conv weight -> (kh, w_in*Cin, w_out*Cout) banded matmul
    weights for activations laid out as (H, W*Cin)."""
    cout, cin, kh, kw = w_oihw.shape
    w_out = w_in - kw + 1
    wt = jnp.transpose(w_oihw, (2, 3, 1, 0)).astype(jnp.float32)   # (kh,kw,Cin,Cout)
    a = jnp.zeros((kh, w_in, cin, w_out, cout), jnp.float32)
    for j in range(kw):
        band = jnp.eye(w_in, w_out, k=-j, dtype=jnp.float32)       # [wo+j, wo] = 1
        a = a + jnp.einsum('wv,hcd->hwcvd', band, wt[:, j])
    return a.reshape(kh, w_in * cin, w_out * cout)


def _expand_bias(b, w_out):
    return jnp.tile(b.astype(jnp.float32), (w_out,)).reshape(1, -1)


def _pool_selectors(h1, w1, c1):
    """Selection matrices so a 2x2/2 max-pool becomes matmuls + max."""
    hp, wp = h1 // 2, w1 // 2
    eye_h = jnp.eye(h1, dtype=jnp.float32)
    s = jnp.stack([eye_h[0:2 * hp:2, :], eye_h[1:2 * hp:2, :]], axis=0)  # (2,hp,h1)
    m = jnp.arange(wp * c1)
    idx = (m // c1) * (2 * c1) + (m % c1)
    eye_w = jnp.eye(w1 * c1, dtype=jnp.float32)
    p = jnp.stack([eye_w[:, idx], eye_w[:, idx + c1]], axis=0)           # (2,w1*c1,wp*c1)
    return s, p


def prepare_params(params, H=16, W=16):
    """Hoisted, one-time conversion of torch-layout weights to matmul-ready
    kernel operands (banded conv matrices, tiled biases, pool selectors)."""
    h1, w1 = H - 2, W - 2          # after conv1
    hp, wp = h1 // 2, w1 // 2      # after pool
    w2 = wp - 2                    # after conv2
    w3 = w2 - 2                    # after conv3
    s, p = _pool_selectors(h1, w1, 10)
    w_head = jnp.concatenate([params["wc"], params["wo"]], axis=0)   # (5,32,1,1)
    b_head = jnp.concatenate([params["bc"], params["bo"]], axis=0)   # (5,)
    return dict(
        a1=_expand_conv(params["w1"], W),  b1=_expand_bias(params["b1"], w1),
        s=s, p=p,
        a2=_expand_conv(params["w2"], wp), b2=_expand_bias(params["b2"], w2),
        a3=_expand_conv(params["w3"], w2), b3=_expand_bias(params["b3"], w3),
        ah=_expand_conv(w_head, w3),       bh=_expand_bias(b_head, w3),
    )


# ------------------------------- parameters --------------------------------

def _conv_params(kw_key, kb_key, cout, cin, kh, kw):
    fan_in = cin * kh * kw
    bound = 1.0 / (fan_in ** 0.5)
    w = jax.random.uniform(kw_key, (cout, cin, kh, kw), jnp.float32, -bound, bound)
    b = jax.random.uniform(kb_key, (cout,), jnp.float32, -bound, bound)
    return w, b


def init_params(key):
    ks = jax.random.split(key, 10)
    w1, b1 = _conv_params(ks[0], ks[1], 10, 3, 3, 3)
    w2, b2 = _conv_params(ks[2], ks[3], 16, 10, 3, 3)
    w3, b3 = _conv_params(ks[4], ks[5], 32, 16, 3, 3)
    wc, bc = _conv_params(ks[6], ks[7], 1, 32, 1, 1)
    wo, bo = _conv_params(ks[8], ks[9], 4, 32, 1, 1)
    return dict(w1=w1, b1=b1, w2=w2, b2=b2, w3=w3, b3=b3,
                wc=wc, bc=bc, wo=wo, bo=bo)


# --------------------------------- forward ----------------------------------

def pnet_forward(prepped, x_nchw):
    N, C, H, W = x_nchw.shape
    # NCHW -> (N, H, W*C) slab (lane dim = W*C), the kernel's native layout.
    x = jnp.transpose(x_nchw, (0, 2, 3, 1)).astype(jnp.float32).reshape(N, H, W * C)

    h1, w1 = H - 2, W - 2
    hp, wp = h1 // 2, w1 // 2
    h3, w3 = (hp - 2) - 2, (wp - 2) - 2
    n_head = 5                                   # 1 category + 4 offset channels

    def full_spec(arr):
        nd = arr.ndim
        return pl.BlockSpec(arr.shape, lambda n, _nd=nd: (0,) * _nd)

    weight_args = (prepped["a1"], prepped["b1"], prepped["s"], prepped["p"],
                   prepped["a2"], prepped["b2"], prepped["a3"], prepped["b3"],
                   prepped["ah"], prepped["bh"])

    out = pl.pallas_call(
        _pnet_fused_kernel,
        out_shape=jax.ShapeDtypeStruct((N, h3, w3 * n_head), jnp.float32),
        grid_spec=pltpu.PrefetchScalarGridSpec(
            num_scalar_prefetch=0,
            grid=(N,),
            in_specs=[pl.BlockSpec((1, H, W * C), lambda n: (n, 0, 0))]
                     + [full_spec(a) for a in weight_args],
            out_specs=pl.BlockSpec((1, h3, w3 * n_head), lambda n: (n, 0, 0)),
        ),
        compiler_params=pltpu.CompilerParams(
            dimension_semantics=("parallel",),   # v7x: split batch over 2 TCs
        ),
    )(x, *weight_args)

    out = out.reshape(N, h3, w3, n_head)
    category = jnp.transpose(out[..., 0:1], (0, 3, 1, 2))   # (N,1,3,3) NCHW
    offset = jnp.transpose(out[..., 1:], (0, 3, 1, 2))      # (N,4,3,3) NCHW
    return category, offset


# ------------------------ pure-JAX reference (check) ------------------------

def _ref_conv(x_nchw, w, b):
    y = jax.lax.conv_general_dilated(
        x_nchw, w, (1, 1), "VALID",
        dimension_numbers=("NCHW", "OIHW", "NCHW"))
    return y + b.reshape(1, -1, 1, 1)


def ref_forward(params, x):
    y = _ref_conv(x, params["w1"], params["b1"])
    y1 = jax.lax.reduce_window(y, -jnp.inf, jax.lax.max,
                               (1, 1, 2, 2), (1, 1, 2, 2), "VALID")
    y2 = _ref_conv(y1, params["w2"], params["b2"])
    y3 = _ref_conv(y2, params["w3"], params["b3"])
    category = _ref_conv(y3, params["wc"], params["bc"])
    offset = _ref_conv(y3, params["wo"], params["bo"])
    return category, offset


# ----------------------------------- main ------------------------------------

if __name__ == "__main__":
    key = jax.random.PRNGKey(0)
    pkey, xkey = jax.random.split(key)
    params = init_params(pkey)
    prepped = prepare_params(params, H=16, W=16)   # one-time weight relayout

    x = jax.random.normal(xkey, (2, 3, 16, 16), jnp.float32)   # NCHW like torch

    fwd = jax.jit(pnet_forward)
    category, offset = fwd(prepped, x)
    jax.block_until_ready((category, offset))

    # 16 -conv3-> 14 -pool2-> 7 -conv3-> 5 -conv3-> 3 -conv1-> 3
    assert category.shape == (2, 1, 3, 3), category.shape
    assert offset.shape == (2, 4, 3, 3), offset.shape

    ref_cat, ref_off = ref_forward(params, x)
    assert jnp.allclose(category, ref_cat, atol=1e-4), "category mismatch vs reference"
    assert jnp.allclose(offset, ref_off, atol=1e-4), "offset mismatch vs reference"

    print("KERNEL_OK")
</pallas_src>

<mosaic_0001>
module attributes {stable_mosaic.version = 11 : i64} {
  func.func @_pnet_fused_kernel(%arg0: i32, %arg1: memref<1x16x48xf32, #tpu.memory_space<vmem>>, %arg2: memref<3x48x140xf32, #tpu.memory_space<vmem>>, %arg3: memref<1x140xf32, #tpu.memory_space<vmem>>, %arg4: memref<2x7x14xf32, #tpu.memory_space<vmem>>, %arg5: memref<2x140x70xf32, #tpu.memory_space<vmem>>, %arg6: memref<3x70x80xf32, #tpu.memory_space<vmem>>, %arg7: memref<1x80xf32, #tpu.memory_space<vmem>>, %arg8: memref<3x80x96xf32, #tpu.memory_space<vmem>>, %arg9: memref<1x96xf32, #tpu.memory_space<vmem>>, %arg10: memref<1x96x15xf32, #tpu.memory_space<vmem>>, %arg11: memref<1x15xf32, #tpu.memory_space<vmem>>, %arg12: memref<1x3x15xf32, #tpu.memory_space<vmem>>) attributes {dimension_semantics = [#tpu.dimension_semantics<parallel>], iteration_bounds = array<i64: 2>, scalar_prefetch = 0 : i64, scratch_operands = 0 : i64, tpu.core_type = #tpu.core_type<tc>, window_params = [{transform_indices = @transform_0, window_bounds = array<i64: 1, 16, 48>}, {pipeline_mode = #tpu.pipeline_mode<synchronous>, transform_indices = @transform_1, window_bounds = array<i64: 3, 48, 140>}, {pipeline_mode = #tpu.pipeline_mode<synchronous>, transform_indices = @transform_2, window_bounds = array<i64: 1, 140>}, {pipeline_mode = #tpu.pipeline_mode<synchronous>, transform_indices = @transform_3, window_bounds = array<i64: 2, 7, 14>}, {pipeline_mode = #tpu.pipeline_mode<synchronous>, transform_indices = @transform_4, window_bounds = array<i64: 2, 140, 70>}, {pipeline_mode = #tpu.pipeline_mode<synchronous>, transform_indices = @transform_5, window_bounds = array<i64: 3, 70, 80>}, {pipeline_mode = #tpu.pipeline_mode<synchronous>, transform_indices = @transform_6, window_bounds = array<i64: 1, 80>}, {pipeline_mode = #tpu.pipeline_mode<synchronous>, transform_indices = @transform_7, window_bounds = array<i64: 3, 80, 96>}, {pipeline_mode = #tpu.pipeline_mode<synchronous>, transform_indices = @transform_8, window_bounds = array<i64: 1, 96>}, {pipeline_mode = #tpu.pipeline_mode<synchronous>, transform_indices = @transform_9, window_bounds = array<i64: 1, 96, 15>}, {pipeline_mode = #tpu.pipeline_mode<synchronous>, transform_indices = @transform_10, window_bounds = array<i64: 1, 15>}, {transform_indices = @transform_11, window_bounds = array<i64: 1, 3, 15>}]} {
    %c0 = arith.constant 0 : index
    %c0_0 = arith.constant 0 : index
    %c0_1 = arith.constant 0 : index
    %0 = vector.load %arg1[%c0, %c0_0, %c0_1] : memref<1x16x48xf32, #tpu.memory_space<vmem>>, vector<1x16x48xf32>
    %1 = vector.shape_cast %0 : vector<1x16x48xf32> to vector<16x48xf32>
    %c0_2 = arith.constant 0 : index
    %c0_3 = arith.constant 0 : index
    %2 = vector.load %arg3[%c0_2, %c0_3] : memref<1x140xf32, #tpu.memory_space<vmem>>, vector<1x140xf32>
    %3 = vector.extract_strided_slice %1 {offsets = [0, 0], sizes = [14, 48], strides = [1, 1]} : vector<16x48xf32> to vector<14x48xf32>
    %c0_4 = arith.constant 0 : index
    %c0_5 = arith.constant 0 : index
    %c0_6 = arith.constant 0 : index
    %4 = vector.load %arg2[%c0_4, %c0_5, %c0_6] : memref<3x48x140xf32, #tpu.memory_space<vmem>>, vector<1x48x140xf32>
    %5 = vector.shape_cast %4 : vector<1x48x140xf32> to vector<48x140xf32>
    %cst = arith.constant dense<0.000000e+00> : vector<14x140xf32>
    %6 = tpu.matmul %3, %5, %cst {dimension_numbers = #tpu.dot_dimension_numbers<[1], [0], [0], [1], [0, 0, 1, 1], [], []>} : vector<14x48xf32>, vector<48x140xf32>, vector<14x140xf32> -> vector<14x140xf32>
    %7 = vector.broadcast %2 : vector<1x140xf32> to vector<14x140xf32>
    %8 = arith.addf %7, %6 : vector<14x140xf32>
    %9 = vector.extract_strided_slice %1 {offsets = [1, 0], sizes = [14, 48], strides = [1, 1]} : vector<16x48xf32> to vector<14x48xf32>
    %c1 = arith.constant 1 : index
    %c0_7 = arith.constant 0 : index
    %c0_8 = arith.constant 0 : index
    %10 = vector.load %arg2[%c1, %c0_7, %c0_8] : memref<3x48x140xf32, #tpu.memory_space<vmem>>, vector<1x48x140xf32>
    %11 = vector.shape_cast %10 : vector<1x48x140xf32> to vector<48x140xf32>
    %cst_9 = arith.constant dense<0.000000e+00> : vector<14x140xf32>
    %12 = tpu.matmul %9, %11, %cst_9 {dimension_numbers = #tpu.dot_dimension_numbers<[1], [0], [0], [1], [0, 0, 1, 1], [], []>} : vector<14x48xf32>, vector<48x140xf32>, vector<14x140xf32> -> vector<14x140xf32>
    %13 = arith.addf %8, %12 : vector<14x140xf32>
    %14 = vector.extract_strided_slice %1 {offsets = [2, 0], sizes = [14, 48], strides = [1, 1]} : vector<16x48xf32> to vector<14x48xf32>
    %c2 = arith.constant 2 : index
    %c0_10 = arith.constant 0 : index
    %c0_11 = arith.constant 0 : index
    %15 = vector.load %arg2[%c2, %c0_10, %c0_11] : memref<3x48x140xf32, #tpu.memory_space<vmem>>, vector<1x48x140xf32>
    %16 = vector.shape_cast %15 : vector<1x48x140xf32> to vector<48x140xf32>
    %cst_12 = arith.constant dense<0.000000e+00> : vector<14x140xf32>
    %17 = tpu.matmul %14, %16, %cst_12 {dimension_numbers = #tpu.dot_dimension_numbers<[1], [0], [0], [1], [0, 0, 1, 1], [], []>} : vector<14x48xf32>, vector<48x140xf32>, vector<14x140xf32> -> vector<14x140xf32>
    %18 = arith.addf %13, %17 : vector<14x140xf32>
    %c0_13 = arith.constant 0 : index
    %c0_14 = arith.constant 0 : index
    %c0_15 = arith.constant 0 : index
    %19 = vector.load %arg4[%c0_13, %c0_14, %c0_15] : memref<2x7x14xf32, #tpu.memory_space<vmem>>, vector<1x7x14xf32>
    %20 = vector.shape_cast %19 : vector<1x7x14xf32> to vector<7x14xf32>
    %cst_16 = arith.constant dense<0.000000e+00> : vector<7x140xf32>
    %21 = tpu.matmul %20, %18, %cst_16 {dimension_numbers = #tpu.dot_dimension_numbers<[1], [0], [0], [1], [0, 0, 1, 1], [], []>} : vector<7x14xf32>, vector<14x140xf32>, vector<7x140xf32> -> vector<7x140xf32>
    %c1_17 = arith.constant 1 : index
    %c0_18 = arith.constant 0 : index
    %c0_19 = arith.constant 0 : index
    %22 = vector.load %arg4[%c1_17, %c0_18, %c0_19] : memref<2x7x14xf32, #tpu.memory_space<vmem>>, vector<1x7x14xf32>
    %23 = vector.shape_cast %22 : vector<1x7x14xf32> to vector<7x14xf32>
    %cst_20 = arith.constant dense<0.000000e+00> : vector<7x140xf32>
    %24 = tpu.matmul %23, %18, %cst_20 {dimension_numbers = #tpu.dot_dimension_numbers<[1], [0], [0], [1], [0, 0, 1, 1], [], []>} : vector<7x14xf32>, vector<14x140xf32>, vector<7x140xf32> -> vector<7x140xf32>
    %25 = arith.maximumf %21, %24 : vector<7x140xf32>
    %c0_21 = arith.constant 0 : index
    %c0_22 = arith.constant 0 : index
    %c0_23 = arith.constant 0 : index
    %26 = vector.load %arg5[%c0_21, %c0_22, %c0_23] : memref<2x140x70xf32, #tpu.memory_space<vmem>>, vector<1x140x70xf32>
    %27 = vector.shape_cast %26 : vector<1x140x70xf32> to vector<140x70xf32>
    %cst_24 = arith.constant dense<0.000000e+00> : vector<7x70xf32>
    %28 = tpu.matmul %25, %27, %cst_24 {dimension_numbers = #tpu.dot_dimension_numbers<[1], [0], [0], [1], [0, 0, 1, 1], [], []>} : vector<7x140xf32>, vector<140x70xf32>, vector<7x70xf32> -> vector<7x70xf32>
    %c1_25 = arith.constant 1 : index
    %c0_26 = arith.constant 0 : index
    %c0_27 = arith.constant 0 : index
    %29 = vector.load %arg5[%c1_25, %c0_26, %c0_27] : memref<2x140x70xf32, #tpu.memory_space<vmem>>, vector<1x140x70xf32>
    %30 = vector.shape_cast %29 : vector<1x140x70xf32> to vector<140x70xf32>
    %cst_28 = arith.constant dense<0.000000e+00> : vector<7x70xf32>
    %31 = tpu.matmul %25, %30, %cst_28 {dimension_numbers = #tpu.dot_dimension_numbers<[1], [0], [0], [1], [0, 0, 1, 1], [], []>} : vector<7x140xf32>, vector<140x70xf32>, vector<7x70xf32> -> vector<7x70xf32>
    %32 = arith.maximumf %28, %31 : vector<7x70xf32>
    %c0_29 = arith.constant 0 : index
    %c0_30 = arith.constant 0 : index
    %33 = vector.load %arg7[%c0_29, %c0_30] : memref<1x80xf32, #tpu.memory_space<vmem>>, vector<1x80xf32>
    %34 = vector.extract_strided_slice %32 {offsets = [0, 0], sizes = [5, 70], strides = [1, 1]} : vector<7x70xf32> to vector<5x70xf32>
    %c0_31 = arith.constant 0 : index
    %c0_32 = arith.constant 0 : index
    %c0_33 = arith.constant 0 : index
    %35 = vector.load %arg6[%c0_31, %c0_32, %c0_33] : memref<3x70x80xf32, #tpu.memory_space<vmem>>, vector<1x70x80xf32>
    %36 = vector.shape_cast %35 : vector<1x70x80xf32> to vector<70x80xf32>
    %cst_34 = arith.constant dense<0.000000e+00> : vector<5x80xf32>
    %37 = tpu.matmul %34, %36, %cst_34 {dimension_numbers = #tpu.dot_dimension_numbers<[1], [0], [0], [1], [0, 0, 1, 1], [], []>} : vector<5x70xf32>, vector<70x80xf32>, vector<5x80xf32> -> vector<5x80xf32>
    %38 = vector.broadcast %33 : vector<1x80xf32> to vector<5x80xf32>
    %39 = arith.addf %38, %37 : vector<5x80xf32>
    %40 = vector.extract_strided_slice %32 {offsets = [1, 0], sizes = [5, 70], strides = [1, 1]} : vector<7x70xf32> to vector<5x70xf32>
    %c1_35 = arith.constant 1 : index
    %c0_36 = arith.constant 0 : index
    %c0_37 = arith.constant 0 : index
    %41 = vector.load %arg6[%c1_35, %c0_36, %c0_37] : memref<3x70x80xf32, #tpu.memory_space<vmem>>, vector<1x70x80xf32>
    %42 = vector.shape_cast %41 : vector<1x70x80xf32> to vector<70x80xf32>
    %cst_38 = arith.constant dense<0.000000e+00> : vector<5x80xf32>
    %43 = tpu.matmul %40, %42, %cst_38 {dimension_numbers = #tpu.dot_dimension_numbers<[1], [0], [0], [1], [0, 0, 1, 1], [], []>} : vector<5x70xf32>, vector<70x80xf32>, vector<5x80xf32> -> vector<5x80xf32>
    %44 = arith.addf %39, %43 : vector<5x80xf32>
    %45 = vector.extract_strided_slice %32 {offsets = [2, 0], sizes = [5, 70], strides = [1, 1]} : vector<7x70xf32> to vector<5x70xf32>
    %c2_39 = arith.constant 2 : index
    %c0_40 = arith.constant 0 : index
    %c0_41 = arith.constant 0 : index
    %46 = vector.load %arg6[%c2_39, %c0_40, %c0_41] : memref<3x70x80xf32, #tpu.memory_space<vmem>>, vector<1x70x80xf32>
    %47 = vector.shape_cast %46 : vector<1x70x80xf32> to vector<70x80xf32>
    %cst_42 = arith.constant dense<0.000000e+00> : vector<5x80xf32>
    %48 = tpu.matmul %45, %47, %cst_42 {dimension_numbers = #tpu.dot_dimension_numbers<[1], [0], [0], [1], [0, 0, 1, 1], [], []>} : vector<5x70xf32>, vector<70x80xf32>, vector<5x80xf32> -> vector<5x80xf32>
    %49 = arith.addf %44, %48 : vector<5x80xf32>
    %c0_43 = arith.constant 0 : index
    %c0_44 = arith.constant 0 : index
    %50 = vector.load %arg9[%c0_43, %c0_44] : memref<1x96xf32, #tpu.memory_space<vmem>>, vector<1x96xf32>
    %51 = vector.extract_strided_slice %49 {offsets = [0, 0], sizes = [3, 80], strides = [1, 1]} : vector<5x80xf32> to vector<3x80xf32>
    %c0_45 = arith.constant 0 : index
    %c0_46 = arith.constant 0 : index
    %c0_47 = arith.constant 0 : index
    %52 = vector.load %arg8[%c0_45, %c0_46, %c0_47] : memref<3x80x96xf32, #tpu.memory_space<vmem>>, vector<1x80x96xf32>
    %53 = vector.shape_cast %52 : vector<1x80x96xf32> to vector<80x96xf32>
    %cst_48 = arith.constant dense<0.000000e+00> : vector<3x96xf32>
    %54 = tpu.matmul %51, %53, %cst_48 {dimension_numbers = #tpu.dot_dimension_numbers<[1], [0], [0], [1], [0, 0, 1, 1], [], []>} : vector<3x80xf32>, vector<80x96xf32>, vector<3x96xf32> -> vector<3x96xf32>
    %55 = vector.broadcast %50 : vector<1x96xf32> to vector<3x96xf32>
    %56 = arith.addf %55, %54 : vector<3x96xf32>
    %57 = vector.extract_strided_slice %49 {offsets = [1, 0], sizes = [3, 80], strides = [1, 1]} : vector<5x80xf32> to vector<3x80xf32>
    %c1_49 = arith.constant 1 : index
    %c0_50 = arith.constant 0 : index
    %c0_51 = arith.constant 0 : index
    %58 = vector.load %arg8[%c1_49, %c0_50, %c0_51] : memref<3x80x96xf32, #tpu.memory_space<vmem>>, vector<1x80x96xf32>
    %59 = vector.shape_cast %58 : vector<1x80x96xf32> to vector<80x96xf32>
    %cst_52 = arith.constant dense<0.000000e+00> : vector<3x96xf32>
    %60 = tpu.matmul %57, %59, %cst_52 {dimension_numbers = #tpu.dot_dimension_numbers<[1], [0], [0], [1], [0, 0, 1, 1], [], []>} : vector<3x80xf32>, vector<80x96xf32>, vector<3x96xf32> -> vector<3x96xf32>
    %61 = arith.addf %56, %60 : vector<3x96xf32>
    %62 = vector.extract_strided_slice %49 {offsets = [2, 0], sizes = [3, 80], strides = [1, 1]} : vector<5x80xf32> to vector<3x80xf32>
    %c2_53 = arith.constant 2 : index
    %c0_54 = arith.constant 0 : index
    %c0_55 = arith.constant 0 : index
    %63 = vector.load %arg8[%c2_53, %c0_54, %c0_55] : memref<3x80x96xf32, #tpu.memory_space<vmem>>, vector<1x80x96xf32>
    %64 = vector.shape_cast %63 : vector<1x80x96xf32> to vector<80x96xf32>
    %cst_56 = arith.constant dense<0.000000e+00> : vector<3x96xf32>
    %65 = tpu.matmul %62, %64, %cst_56 {dimension_numbers = #tpu.dot_dimension_numbers<[1], [0], [0], [1], [0, 0, 1, 1], [], []>} : vector<3x80xf32>, vector<80x96xf32>, vector<3x96xf32> -> vector<3x96xf32>
    %66 = arith.addf %61, %65 : vector<3x96xf32>
    %c0_57 = arith.constant 0 : index
    %c0_58 = arith.constant 0 : index
    %67 = vector.load %arg11[%c0_57, %c0_58] : memref<1x15xf32, #tpu.memory_space<vmem>>, vector<1x15xf32>
    %c0_59 = arith.constant 0 : index
    %c0_60 = arith.constant 0 : index
    %c0_61 = arith.constant 0 : index
    %68 = vector.load %arg10[%c0_59, %c0_60, %c0_61] : memref<1x96x15xf32, #tpu.memory_space<vmem>>, vector<1x96x15xf32>
    %69 = vector.shape_cast %68 : vector<1x96x15xf32> to vector<96x15xf32>
    %cst_62 = arith.constant dense<0.000000e+00> : vector<3x15xf32>
    %70 = tpu.matmul %66, %69, %cst_62 {dimension_numbers = #tpu.dot_dimension_numbers<[1], [0], [0], [1], [0, 0, 1, 1], [], []>} : vector<3x96xf32>, vector<96x15xf32>, vector<3x15xf32> -> vector<3x15xf32>
    %71 = vector.broadcast %67 : vector<1x15xf32> to vector<3x15xf32>
    %72 = arith.addf %71, %70 : vector<3x15xf32>
    %c0_63 = arith.constant 0 : index
    %c0_64 = arith.constant 0 : index
    %c0_65 = arith.constant 0 : index
    %73 = vector.load %arg12[%c0_63, %c0_64, %c0_65] : memref<1x3x15xf32, #tpu.memory_space<vmem>>, vector<1x3x15xf32>
    %74 = vector.shape_cast %73 : vector<1x3x15xf32> to vector<3x15xf32>
    %75 = vector.shape_cast %72 : vector<3x15xf32> to vector<1x3x15xf32>
    tpu.vector_store %arg12[%c0_63, %c0_64, %c0_65], %75 {strides = array<i32>} : memref<1x3x15xf32, #tpu.memory_space<vmem>>, vector<1x3x15xf32>,
    return
  }
  func.func @transform_0(%arg0: i32) -> (i32, i32, i32) {
    %c0_i32 = arith.constant 0 : i32
    %c0_i32_0 = arith.constant 0 : i32
    %c0_i32_1 = arith.constant 0 : i32
    return %arg0, %c0_i32, %c0_i32_0 : i32, i32, i32
  }
  func.func @transform_1(%arg0: i32) -> (i32, i32, i32) {
    %c0_i32 = arith.constant 0 : i32
    %c0_i32_0 = arith.constant 0 : i32
    %c0_i32_1 = arith.constant 0 : i32
    %c0_i32_2 = arith.constant 0 : i32
    return %c0_i32, %c0_i32_0, %c0_i32_1 : i32, i32, i32
  }
  func.func @transform_2(%arg0: i32) -> (i32, i32) {
    %c0_i32 = arith.constant 0 : i32
    %c0_i32_0 = arith.constant 0 : i32
    %c0_i32_1 = arith.constant 0 : i32
    return %c0_i32, %c0_i32_0 : i32, i32
  }
  func.func @transform_3(%arg0: i32) -> (i32, i32, i32) {
    %c0_i32 = arith.constant 0 : i32
    %c0_i32_0 = arith.constant 0 : i32
    %c0_i32_1 = arith.constant 0 : i32
    %c0_i32_2 = arith.constant 0 : i32
    return %c0_i32, %c0_i32_0, %c0_i32_1 : i32, i32, i32
  }
  func.func @transform_4(%arg0: i32) -> (i32, i32, i32) {
    %c0_i32 = arith.constant 0 : i32
    %c0_i32_0 = arith.constant 0 : i32
    %c0_i32_1 = arith.constant 0 : i32
    %c0_i32_2 = arith.constant 0 : i32
    return %c0_i32, %c0_i32_0, %c0_i32_1 : i32, i32, i32
  }
  func.func @transform_5(%arg0: i32) -> (i32, i32, i32) {
    %c0_i32 = arith.constant 0 : i32
    %c0_i32_0 = arith.constant 0 : i32
    %c0_i32_1 = arith.constant 0 : i32
    %c0_i32_2 = arith.constant 0 : i32
    return %c0_i32, %c0_i32_0, %c0_i32_1 : i32, i32, i32
  }
  func.func @transform_6(%arg0: i32) -> (i32, i32) {
    %c0_i32 = arith.constant 0 : i32
    %c0_i32_0 = arith.constant 0 : i32
    %c0_i32_1 = arith.constant 0 : i32
    return %c0_i32, %c0_i32_0 : i32, i32
  }
  func.func @transform_7(%arg0: i32) -> (i32, i32, i32) {
    %c0_i32 = arith.constant 0 : i32
    %c0_i32_0 = arith.constant 0 : i32
    %c0_i32_1 = arith.constant 0 : i32
    %c0_i32_2 = arith.constant 0 : i32
    return %c0_i32, %c0_i32_0, %c0_i32_1 : i32, i32, i32
  }
  func.func @transform_8(%arg0: i32) -> (i32, i32) {
    %c0_i32 = arith.constant 0 : i32
    %c0_i32_0 = arith.constant 0 : i32
    %c0_i32_1 = arith.constant 0 : i32
    return %c0_i32, %c0_i32_0 : i32, i32
  }
  func.func @transform_9(%arg0: i32) -> (i32, i32, i32) {
    %c0_i32 = arith.constant 0 : i32
    %c0_i32_0 = arith.constant 0 : i32
    %c0_i32_1 = arith.constant 0 : i32
    %c0_i32_2 = arith.constant 0 : i32
    return %c0_i32, %c0_i32_0, %c0_i32_1 : i32, i32, i32
  }
  func.func @transform_10(%arg0: i32) -> (i32, i32) {
    %c0_i32 = arith.constant 0 : i32
    %c0_i32_0 = arith.constant 0 : i32
    %c0_i32_1 = arith.constant 0 : i32
    return %c0_i32, %c0_i32_0 : i32, i32
  }
  func.func @transform_11(%arg0: i32) -> (i32, i32, i32) {
    %c0_i32 = arith.constant 0 : i32
    %c0_i32_0 = arith.constant 0 : i32
    %c0_i32_1 = arith.constant 0 : i32
    return %arg0, %c0_i32, %c0_i32_0 : i32, i32, i32
  }
}

</mosaic_0001>

<bundles_post_ra>
// kernel: pnet_forward.1
= control target key start
LH: loop header
LB: loop body
LE: loop exit
PB: predicated region body
PF: predicated region fallthrough
CT: control target
= control target key end

     0   :  { %s2396_s17 = smov 0   ;;  %s2953_s0 = inlined_call_operand.vmem [shape: f32[2,16,48], index: 0, kind: input, shape index: {}]   ;;  %s2954_s1 = inlined_call_operand.vmem [shape: f32[3,48,140], index: 1, kind: input, shape index: {}]   ;;  %s2955_s2 = inlined_call_operand.vmem [shape: f32[1,140], index: 2, kind: input, shape index: {}]   ;;  %s2956_s3 = inlined_call_operand.vmem [shape: f32[2,7,14], index: 3, kind: input, shape index: {}]   ;;  %s2957_s4 = inlined_call_operand.vmem [shape: f32[2,140,70], index: 4, kind: input, shape index: {}]   ;;  %s2958_s5 = inlined_call_operand.vmem [shape: f32[3,70,80], index: 5, kind: input, shape index: {}]   ;;  %s2959_s6 = inlined_call_operand.vmem [shape: f32[1,80], index: 6, kind: input, shape index: {}]   ;;  %s2960_s7 = inlined_call_operand.vmem [shape: f32[3,80,96], index: 7, kind: input, shape index: {}]   ;;  %s2961_s8 = inlined_call_operand.vmem [shape: f32[1,96], index: 8, kind: input, shape index: {}]   ;;  %s2962_s9 = inlined_call_operand.vmem [shape: f32[1,96,15], index: 9, kind: input, shape index: {}]   ;;  %s2963_s10 = inlined_call_operand.vmem [shape: f32[1,15], index: 10, kind: input, shape index: {}]   ;;  %s2964_s11 = inlined_call_operand.vmem [shape: f32[2,3,15], index: 11, kind: output, shape index: {}]  }
   0x1 LB: > { %s1731_s18 = sadd.s32 4294967295, %s2330_s17   ;;  %p1735_p0 = scmp.ge.s32.totalorder %s2330_s17, 1  ;;  %s2330_s17 = sphi %s2396_s17, %s21_s17  }
   0x2   : > { %p337_p1 = scmp.lt.s32.totalorder %s2330_s17, 3 }
   0x4   : > { %p338_p2 = pnand %p1735_p0, %p337_p1 }
   0x5   : > { %v389_v0 = vld [vmem:[%s2954_s1 + $0x8] sm:$0xff] (!%p338_p2)  ;;  %v391_v1 = vld [vmem:[%s2954_s1 + $0x18] sm:$0xff] (!%p338_p2)  ;;  %v388_v2 = vld [vmem:[%s2954_s1] sm:$0xff] (!%p338_p2)  ;;  %p376_p3 = scmp.lt.s32.totalorder (!%p338_p2), %s1731_s18, 1  ;;  %v2332_v7 = vmov (!%p338_p2), 0.0   ;;  %vm400_vm0 = vcmask (!%p338_p2), 392192  }
   0x6   : > { %341 = sbr.rel (%p338_p2) target bundleno = 1422 (0x58e), region = 64  ;;  %v2087_v3 = vpack.c.bf16 (!%p338_p2), %v391_v1, %v389_v0  ;;  %v390_v4 = vld [vmem:[%s2954_s1 + $0x10] sm:$0xff] (!%p338_p2)  ;;  %v393_v5 = vld [vmem:[%s2954_s1 + $0x28] sm:$0xff] (!%p338_p2)  ;;  %v395_v6 = vld [vmem:[%s2954_s1 + $0x38] sm:$0xff] (!%p338_p2)  ;;  %471 = vmatprep.mubr.f32.mxu0 (!%p338_p2), %v2332_v7  ;;  %778 = vmatprep.mubr.f32.mxu1 (!%p338_p2), %v2332_v7  ;;  %vm512_vm1 = vcmask (!%p338_p2), 1046528   ;;  %vm614_vm2 = vcmask (!%p338_p2), 1045504  }
   0x7   : > { %v2089_v8 = vpack.c.bf16 (!%p338_p2), %v390_v4, %v388_v2  ;;  %v2091_v9 = vpack.c.bf16 (!%p338_p2), %v395_v6, %v393_v5  ;;  %v392_v10 = vld [vmem:[%s2954_s1 + $0x20] sm:$0xff] (!%p338_p2)  ;;  %v394_v11 = vld [vmem:[%s2954_s1 + $0x30] sm:$0xff] (!%p338_p2)  ;;  %v397_v12 = vld [vmem:[%s2954_s1 + $0x48] sm:$0xff] (!%p338_p2)  ;;  %v2333_v63 = vmov (!%p338_p2), 0.0|0.0   ;;  %vm2334_vm3 = vmmov (!%p338_p2), 1  }
   0x8   : > { %2088 = vmatprep.subr.bf16.mxu0 (!%p338_p2), %v2087_v3  ;;  %v399_v13 = vld [vmem:[%s2954_s1 + $0x58] sm:$0xff] (!%p338_p2)  ;;  %v2093_v14 = vpack.c.bf16 (!%p338_p2), %v394_v11, %v392_v10  ;;  %v396_v16 = vld [vmem:[%s2954_s1 + $0x40] sm:$0xff] (!%p338_p2)  ;;  %v398_v17 = vld [vmem:[%s2954_s1 + $0x50] sm:$0xff] (!%p338_p2)  ;;  %vm704_vm5 = vcmask (!%p338_p2), 113664   ;;  %vm885_vm6 = vcmask (!%p338_p2), 1043456   ;;  %vm881_vm8 = vcmask (!%p338_p2), 97280  }
   0x9   : > { %2090 = vmatpush1.bf16.msra.mxu0 (!%p338_p2), %v2089_v8  ;;  %v2095_v15 = vpack.c.bf16 (!%p338_p2), %v399_v13, %v397_v12  ;;  %v1742_v18 = vld [vmem:[%s2954_s1 + $0x68] sm:$0xff] (!%p338_p2)  ;;  %v1744_v19 = vld [vmem:[%s2954_s1 + $0x78] sm:$0xff] (!%p338_p2)  ;;  %v2097_v20 = vpack.c.bf16 (!%p338_p2), %v398_v17, %v396_v16  ;;  %v1741_v22 = vld [vmem:[%s2954_s1 + $0x60] sm:$0xff] (!%p338_p2)  ;;  %vm2335_vm9 = vmmov (!%p338_p2), 0   ;;  %vm1062_vm10 = vcmask (!%p338_p2), 572416  }
   0xa   : > { %2092 = vmatprep.subr.bf16.mxu0 (!%p338_p2), %v2091_v9  ;;  %v2099_v21 = vpack.c.bf16 (!%p338_p2), %v1744_v19, %v1742_v18  ;;  %v1743_v23 = vld [vmem:[%s2954_s1 + $0x70] sm:$0xff] (!%p338_p2)  ;;  %v1746_v24 = vld [vmem:[%s2954_s1 + $0x88] sm:$0xff] (!%p338_p2)  ;;  %v1748_v25 = vld [vmem:[%s2954_s1 + $0x98] sm:$0xff] (!%p338_p2)  ;;  %vm1331_vm11 = vcmask (!%p338_p2), 654336   ;;  %vm1595_vm12 = vcmask (!%p338_p2), 785408   ;;  %vm1676_vm13 = vcmask (!%p338_p2), 116736  }
   0xb   : > { %v2101_v27 = vpack.c.bf16 (!%p338_p2), %v1743_v23, %v1741_v22  ;;  %v2103_v28 = vpack.c.bf16 (!%p338_p2), %v1748_v25, %v1746_v24  ;;  %v1745_v29 = vld [vmem:[%s2954_s1 + $0x80] sm:$0xff] (!%p338_p2)  ;;  %v1747_v30 = vld [vmem:[%s2954_s1 + $0x90] sm:$0xff] (!%p338_p2)  ;;  %v1750_v31 = vld [vmem:[%s2954_s1 + $0xa8] sm:$0xff] (!%p338_p2)  ;;  %v485_v22 = vlaneseq (!%p338_p2) }
   0xc   : > { %v1752_v32 = vld [vmem:[%s2954_s1 + $0xb8] sm:$0xff] (!%p338_p2)  ;;  %v2105_v33 = vpack.c.bf16 (!%p338_p2), %v1747_v30, %v1745_v29  ;;  %v1749_v36 = vld [vmem:[%s2954_s1 + $0xa0] sm:$0xff] (!%p338_p2)  ;;  %v1751_v37 = vld [vmem:[%s2954_s1 + $0xb0] sm:$0xff] (!%p338_p2) }
   0xd   : > { %s2966_s18 = smov (!%p376_p3, %s1731_s18), 1  ;;  %2094 = vmatpush1.bf16.msra.mxu0 %v2093_v14  ;;  %v2107_v35 = vpack.c.bf16 %v1752_v32, %v1750_v31  ;;  %v1756_v38 = vld [vmem:[%s2954_s1 + $0xc8] sm:$0xff]  ;;  %v1758_v39 = vld [vmem:[%s2954_s1 + $0xd8] sm:$0xff]  ;;  %v2109_v42 = vpack.c.bf16 %v1751_v37, %v1749_v36  ;;  %v1755_v44 = vld [vmem:[%s2954_s1 + $0xc0] sm:$0xff]  ;;  %v486_v23 = vshrl.u32 %v485_v22, 7 }
   0xe   : > { %s1851_s30 = sshll.u32 %s2966_s18, 4  ;;  %2096 = vmatprep.subr.bf16.mxu0 %v2095_v15  ;;  %v2111_v43 = vpack.c.bf16 %v1758_v39, %v1756_v38  ;;  %v1757_v45 = vld [vmem:[%s2954_s1 + $0xd0] sm:$0xff]  ;;  %v1760_v46 = vld [vmem:[%s2954_s1 + $0xe8] sm:$0xff]  ;;  %v1762_v47 = vld [vmem:[%s2954_s1 + $0xf8] sm:$0xff]  ;;  %s1738_s26 = sshll.u32 %s2966_s18, 2 }
   0xf   : > { %s380_s14 = scalar_lea.vmem %s2953_s0, %s1851_s30  ;;  %v2113_v49 = vpack.c.bf16 %v1757_v45, %v1755_v44  ;;  %v2115_v50 = vpack.c.bf16 %v1762_v47, %v1760_v46  ;;  %v1759_v51 = vld [vmem:[%s2954_s1 + $0xe0] sm:$0xff]  ;;  %v1761_v52 = vld [vmem:[%s2954_s1 + $0xf0] sm:$0xff]  ;;  %v1764_v53 = vld [vmem:[%s2954_s1 + $0x108] sm:$0xff]  ;;  %v487_v24 = vsub.s32 0, %v486_v23  ;;  %s384_s12 = scalar_lea.vmem %s2964_s11, %s1738_s26 }
  0x10   : > { %v385_v26 = vld [vmem:[%s380_s14] sm:$0xff]  ;;  %v386_v34 = vld [vmem:[%s380_s14 + $0x8] sm:$0xff]  ;;  %v1766_v54 = vld [vmem:[%s2954_s1 + $0x118] sm:$0xff]  ;;  %v2117_v55 = vpack.c.bf16 %v1761_v52, %v1759_v51 }
  0x11   : > { %2098 = vmatpush1.bf16.msra.mxu0 %v2097_v20  ;;  %v513_v40 = vrot.slane %v385_v26, 1  ;;  %v514_v41 = vrot.slane %v386_v34, 1  ;;  %v2119_v56 = vpack.c.bf16 %v1766_v54, %v1764_v53  ;;  %v1763_v57 = vld [vmem:[%s2954_s1 + $0x100] sm:$0xff]  ;;  %v1765_v58 = vld [vmem:[%s2954_s1 + $0x110] sm:$0xff]  ;;  %v615_v59 = vrot.slane %v385_v26, 2  ;;  %v1779_v1 = vld [vmem:[%s2957_s4 + $0x98] sm:$0xff] }
  0x12   : > { %2100 = vmatprep.subr.bf16.mxu0 %v2099_v21  ;;  %v616_v60 = vrot.slane %v386_v34, 2  ;;  %v2121_v61 = vpack.c.bf16 %v1765_v58, %v1763_v57  ;;  %v1778_v0 = vld [vmem:[%s2957_s4 + $0x90] sm:$0xff]  ;;  %v1780_v3 = vld [vmem:[%s2957_s4 + $0xa0] sm:$0xff]  ;;  %v1781_v4 = vld [vmem:[%s2957_s4 + $0xa8] sm:$0xff] }
  0x13   : > { %v515_v48 = vsel %vm512_vm1, %v513_v40, %v514_v41  ;;  %v2164_v2 = vpack.c.bf16 %v1779_v1, %v1778_v0  ;;  %v2167_v5 = vpack.c.bf16 %v1781_v4, %v1780_v3  ;;  %v1782_v6 = vld [vmem:[%s2957_s4 + $0xb0] sm:$0xff]  ;;  %v1783_v8 = vld [vmem:[%s2957_s4 + $0xb8] sm:$0xff]  ;;  %v1784_v10 = vld [vmem:[%s2957_s4 + $0xc0] sm:$0xff] }
  0x14   : > { %1739 = vmatmul.mubr.msk.f32.vlgmr.msra.gmra.mrb[0].mxu0 %vm400_vm0, %v385_v26  ;;  %v617_v62 = vsel %vm614_vm2, %v615_v59, %v616_v60  ;;  %v2170_v9 = vpack.c.bf16 %v1783_v8, %v1782_v6  ;;  %v1785_v11 = vld [vmem:[%s2957_s4 + $0xc8] sm:$0xff]  ;;  %v1786_v13 = vld [vmem:[%s2957_s4 + $0xd0] sm:$0xff]  ;;  %v1787_v14 = vld [vmem:[%s2957_s4 + $0xd8] sm:$0xff]  ;;  %v491_v26 = vsub.s32 1, %v486_v23 }
  0x15   : > { %2102 = vmatpush1.bf16.msra.mxu0 %v2101_v27  ;;  %477 = vmatprep.mubr.f32.mxu0 %v2332_v7  ;;  %v2173_v12 = vpack.c.bf16 %v1785_v11, %v1784_v10  ;;  %v2176_v15 = vpack.c.bf16 %v1787_v14, %v1786_v13  ;;  %v1788_v16 = vld [vmem:[%s2957_s4 + $0xe0] sm:$0xff]  ;;  %v1789_v17 = vld [vmem:[%s2957_s4 + $0xe8] sm:$0xff]  ;;  %v1790_v19 = vld [vmem:[%s2957_s4 + $0xf0] sm:$0xff] }
  0x16   : > { %2104 = vmatprep.subr.bf16.mxu0 %v2103_v28  ;;  %v2179_v18 = vpack.c.bf16 %v1789_v17, %v1788_v16  ;;  %v1791_v20 = vld [vmem:[%s2957_s4 + $0xf8] sm:$0xff]  ;;  %v387_v25 = vld [vmem:[%s2955_s2] sm:$0x3]  ;;  %vm2124_vm4 = vmpackc.low %vm614_vm2, %vm2334_vm3 }
  0x17   : > { %v2182_v21 = vpack.c.bf16 %v1791_v20, %v1790_v19  ;;  %v488_v28 = vrot.slane %v387_v25, %v487_v24  ;;  %v492_v30 = vrot.slane %v387_v25, %v491_v26  ;;  %v703_v39 = vld [vmem:[%s2956_s3] sm:$0x7f]  ;;  %v865_v44 = vld [vmem:[%s2957_s4 + $0x10] sm:$0xff]  ;;  %v866_v45 = vld [vmem:[%s2957_s4 + $0x18] sm:$0xff] }
  0x18   : > { %1740 = vmatmul.mubr.msk.f32.gmra.mrb[2].mxu0 %vm400_vm0, %v386_v34  ;;  %v863_v40 = vld [vmem:[%s2957_s4] sm:$0xff]  ;;  %v2139_v46 = vpack.c.bf16 %v866_v45, %v865_v44  ;;  %v870_v51 = vld [vmem:[%s2957_s4 + $0x38] sm:$0xff]  ;;  %v872_v54 = vld [vmem:[%s2957_s4 + $0x48] sm:$0xff] }
  0x19   : > { %2106 = vmatpush1.bf16.msra.mxu0 %v2105_v33  ;;  %584 = vmatprep.mubr.f32.mxu0 %v2332_v7  ;;  %v867_v47 = vld [vmem:[%s2957_s4 + $0x20] sm:$0xff]  ;;  %v874_v57 = vld [vmem:[%s2957_s4 + $0x58] sm:$0xff]  ;;  %v1793_v3 = vld [vmem:[%s2957_s4 + $0x108] sm:$0xff] }
  0x1a   : > { %2108 = vmatprep.subr.bf16.mxu0 %v2107_v35  ;;  %v871_v53 = vld [vmem:[%s2957_s4 + $0x40] sm:$0xff]  ;;  %v878_v0 = vld [vmem:[%s2957_s4 + $0x78] sm:$0xff]  ;;  %vm2161_vm7 = vmpackc.low %vm885_vm6, %vm2334_vm3 }
  0x1b   : > { %v875_v59 = vld [vmem:[%s2957_s4 + $0x60] sm:$0xff]  ;;  %v880_v6 = vld [vmem:[%s2957_s4 + $0x88] sm:$0xf]  ;;  %v1794_v8 = vld [vmem:[%s2957_s4 + $0x110] sm:$0xff] }
  0x1c   : > { %v1792_v1 = vld [vmem:[%s2957_s4 + $0x100] sm:$0xff]  ;;  %v1795_v10 = vld [vmem:[%s2957_s4 + $0x118] sm:$0xf]  ;;  %v1058_v25 = vld [vmem:[%s2958_s5 + $0x28] sm:$0xff] }
  0x1d   : > { %2110 = vmatpush1.bf16.msra.mxu0 %v2109_v42  ;;  %v1772_v42 = vld [vmem:[%s2956_s3 + $0x8] sm:$0x7f]  ;;  %v2185_v4 = vpack.c.bf16 %v1793_v3, %v1792_v1  ;;  %v2188_v11 = vpack.c.bf16 %v1795_v10, %v1794_v8  ;;  %v1053_v14 = vld [vmem:[%s2958_s5] sm:$0xff]  ;;  %v1056_v22 = vld [vmem:[%s2958_s5 + $0x18] sm:$0xff] }
  0x1e   : > { %2112 = vmatprep.subr.bf16.mxu0 %v2111_v43  ;;  %v1057_v24 = vld [vmem:[%s2958_s5 + $0x20] sm:$0xff]  ;;  %v1330_v44 = vld [vmem:[%s2960_s7 + $0x48] sm:$0xff]  ;;  %v1813_v1 = vld [vmem:[%s2958_s5 + $0x98] sm:$0xff] }
  0x1f   : > { %v2198_v26 = vpack.c.bf16 %v1058_v25, %v1057_v24  ;;  %v1817_v10 = vld [vmem:[%s2958_s5 + $0xb8] sm:$0xff]  ;;  %v1588_v24 = vld [vmem:[%s2962_s9 + $0x28] sm:$0xff] }
  0x20   : > { %1753 = vmatmul.mubr.msk.f32.vlgmr.msra.gmra.mrb[0].mxu0 %vm400_vm0, %v515_v48  ;;  %v868_v48 = vld [vmem:[%s2957_s4 + $0x28] sm:$0xff] }
  0x21   : > { %2114 = vmatpush1.bf16.msra.mxu0 %v2113_v49  ;;  %590 = vmatprep.mubr.f32.mxu0 %v2332_v7  ;;  %v2142_v49 = vpack.c.bf16 %v868_v48, %v867_v47  ;;  %v1802_v47 = vld [vmem:[%s2958_s5 + $0x50] sm:$0xff] }
  0x22   : > { %2116 = vmatprep.subr.bf16.mxu0 %v2115_v50  ;;  %v869_v50 = vld [vmem:[%s2957_s4 + $0x30] sm:$0xff] }
  0x23   : > { %v2145_v52 = vpack.c.bf16 %v870_v51, %v869_v50 }
  0x24   : > { %1754 = vmatmul.mubr.msk.f32.gmra.mrb[2].mxu0 %vm400_vm0, %v514_v41  ;;  %v864_v41 = vld [vmem:[%s2957_s4 + $0x8] sm:$0xff] }
  0x25   : > { %2118 = vmatpush1.bf16.msra.mxu0 %v2117_v55  ;;  %686 = vmatprep.mubr.f32.mxu0 %v2332_v7  ;;  %v2136_v43 = vpack.c.bf16 %v864_v41, %v863_v40  ;;  %v2148_v55 = vpack.c.bf16 %v872_v54, %v871_v53  ;;  %v1327_v40 = vld [vmem:[%s2960_s7 + $0x30] sm:$0xff]  ;;  %v1328_v41 = vld [vmem:[%s2960_s7 + $0x38] sm:$0xff] }
  0x26   : > { %2120 = vmatprep.subr.bf16.mxu0 %v2119_v56  ;;  %v873_v56 = vld [vmem:[%s2957_s4 + $0x50] sm:$0xff]  ;;  %v1803_v54 = vld [vmem:[%s2958_s5 + $0x58] sm:$0xff] }
  0x27   : > { %v2151_v58 = vpack.c.bf16 %v874_v57, %v873_v56  ;;  %v1805_v57 = vld [vmem:[%s2958_s5 + $0x68] sm:$0xff] }
  0x29   : > { %2122 = vmatpush1.bf16.msra.mxu0 %v2121_v61 }
  0x2a   : > { %2163 = vmatprep.subr.bf16.mxu0 %v2333_v63 }
  0x2c   : > { %1767 = vmatmul.mubr.msk.f32.vlgmr.msra.gmra.mrb[0].mxu0 %vm400_vm0, %v617_v62  ;;  %v877_v62 = vld [vmem:[%s2957_s4 + $0x70] sm:$0xff] }
  0x2d   : > { %692 = vmatprep.mubr.f32.mxu0 %v2332_v7  ;;  %2165 = vmatpush1.bf16.msra.mxu0 %v2164_v2  ;;  %v2157_v2 = vpack.c.bf16 %v878_v0, %v877_v62  ;;  %v1812_v0 = vld [vmem:[%s2958_s5 + $0x90] sm:$0xff] }
  0x2e   : > { %2166 = vmatprep.subr.bf16.mxu0 %v2333_v63  ;;  %v2216_v3 = vpack.c.bf16 %v1813_v1, %v1812_v0  ;;  %v1844_v0 = vld [vmem:[%s2960_s7 + $0xe0] sm:$0xff]  ;;  %v1845_v1 = vld [vmem:[%s2960_s7 + $0xe8] sm:$0xff] }
  0x30   : > { %1768 = vmatmul.mubr.msk.f32.gmra.mrb[2].mxu0 %vm400_vm0, %v616_v60  ;;  %v876_v60 = vld [vmem:[%s2957_s4 + $0x68] sm:$0xff] }
  0x31   : > { %2168 = vmatpush1.bf16.msra.mxu0 %v2167_v5  ;;  %v2154_v61 = vpack.c.bf16 %v876_v60, %v875_v59  ;;  %v879_v5 = vld [vmem:[%s2957_s4 + $0x80] sm:$0xff]  ;;  %v1807_v60 = vld [vmem:[%s2958_s5 + $0x78] sm:$0xff] }
  0x32   : > { %2169 = vmatprep.subr.bf16.mxu0 %v2333_v63 }
  0x35   : > { %2171 = vmatpush1.bf16.msra.mxu0 %v2170_v9  ;;  %v2160_v9 = vpack.c.bf16 %v880_v6, %v879_v5  ;;  %v1814_v5 = vld [vmem:[%s2958_s5 + $0xa0] sm:$0xff]  ;;  %v1815_v6 = vld [vmem:[%s2958_s5 + $0xa8] sm:$0xff] }
  0x36   : > { %2172 = vmatprep.subr.bf16.mxu0 %v2333_v63  ;;  %v2219_v8 = vpack.c.bf16 %v1815_v6, %v1814_v5  ;;  %v1594_v5 = vld [vmem:[%s2962_s9 + $0x58] sm:$0xff] }
  0x39   : > { %2174 = vmatpush1.bf16.msra.mxu0 %v2173_v12 }
  0x3a   : > { %2175 = vmatprep.subr.bf16.mxu0 %v2333_v63 }
  0x3d   : > { %2177 = vmatpush1.bf16.msra.mxu0 %v2176_v15  ;;  %v1054_v15 = vld [vmem:[%s2958_s5 + $0x8] sm:$0xff] }
  0x3e   : > { %2178 = vmatprep.subr.bf16.mxu0 %v2333_v63  ;;  %v2192_v20 = vpack.c.bf16 %v1054_v15, %v1053_v14  ;;  %v1820_v15 = vld [vmem:[%s2958_s5 + $0xd0] sm:$0x3f] }
  0x41   : > { %2180 = vmatpush1.bf16.msra.mxu0 %v2179_v18 }
  0x42   : > { %2181 = vmatprep.subr.bf16.mxu0 %v2333_v63 }
  0x45   : > { %2183 = vmatpush1.bf16.msra.mxu0 %v2182_v21  ;;  %v1055_v21 = vld [vmem:[%s2958_s5 + $0x10] sm:$0xff] }
  0x46   : > { %2184 = vmatprep.subr.bf16.mxu0 %v2333_v63  ;;  %v2195_v23 = vpack.c.bf16 %v1056_v22, %v1055_v21  ;;  %v1586_v21 = vld [vmem:[%s2962_s9 + $0x18] sm:$0xff] }
  0x49   : > { %2186 = vmatpush1.bf16.msra.mxu0 %v2185_v4 }
  0x4a   : > { %2187 = vmatprep.subr.bf16.mxu0 %v2333_v63 }
  0x4d   : > { %2190 = vmatpush1.bf16.msk.msra.mxu0 %vm2161_vm7, %v2188_v11 }
  0x4e   : > { %2227 = vmatprep.subr.bf16.mxu0 %v2333_v63 }
  0xff   : > { %v688_v27 = vpop.f32.mrb[0].mxu0 }
 0x100   : > { %v690_v29 = vpop.f32.mrb[1].mxu0  ;;  %v2290_v32 = vadd.f32 %v688_v27, %v488_v28  ;;  %v1059_v27 = vld [vmem:[%s2958_s5 + $0x30] sm:$0xff] }
 0x101   : > { %v2291_v35 = vadd.f32 %v690_v29, %v492_v30 }
 0x103   : > { %v694_v31 = vpop.f32.mrb[2].mxu0 }
 0x104   : > { %v2292_v33 = vadd.f32 %v694_v31, %v488_v28  ;;  %v696_v34 = vpop.f32.mrb[3].mxu0  ;;  %v1060_v28 = vld [vmem:[%s2958_s5 + $0x38] sm:$0xff]  ;;  %v1321_v31 = vld [vmem:[%s2960_s7] sm:$0xff] }
 0x105   : > { %v2293_v36 = vadd.f32 %v696_v34, %v492_v30  ;;  %v2201_v29 = vpack.c.bf16 %v1060_v28, %v1059_v27  ;;  %v1061_v30 = vld [vmem:[%s2958_s5 + $0x40] sm:$0x3f]  ;;  %v1590_v27 = vld [vmem:[%s2962_s9 + $0x38] sm:$0xff] }
 0x106   : > { %v2126_v37 = vpack.c.bf16 %v2292_v33, %v2290_v32  ;;  %v1322_v32 = vld [vmem:[%s2960_s7 + $0x8] sm:$0xff]  ;;  %v1323_v33 = vld [vmem:[%s2960_s7 + $0x10] sm:$0xff] }
 0x107   : > { %v2123_v38 = vpack.c.bf16 %v2293_v36, %v2291_v35  ;;  %v2228_v34 = vpack.c.bf16 %v1322_v32, %v1321_v31  ;;  %v1324_v35 = vld [vmem:[%s2960_s7 + $0x18] sm:$0xff]  ;;  %v1825_v32 = vld [vmem:[%s2960_s7 + $0x50] sm:$0xff] }
 0x108   : > { %v2231_v36 = vpack.c.bf16 %v1324_v35, %v1323_v33  ;;  %v1826_v33 = vld [vmem:[%s2960_s7 + $0x58] sm:$0xff] }
 0x109   : > { %2125 = vmatprep.subr.msk.bf16.mxu1 %vm2124_vm4, %v2123_v38 }
 0x10a   : > { %2128 = vmatpush1.bf16.msk.msra.mxu1 %vm2124_vm4, %v2126_v37 }
 0x10b   : > { %2131 = vmatprep.subr.msk.bf16.mxu1 %vm2124_vm4, %v2123_v38  ;;  %v1326_v38 = vld [vmem:[%s2960_s7 + $0x28] sm:$0xff] }
 0x10d   : > { %1771 = vmatmul.mubr.msk.f32.vlgmr.msra.gmra.mrb[0].mxu1 %vm704_vm5, %v703_v39 }
 0x10e   : > { %2134 = vmatpush1.bf16.msk.msra.mxu1 %vm2124_vm4, %v2126_v37  ;;  %854 = vmatprep.mubr.f32.mxu1 %v2332_v7  ;;  %v1325_v37 = vld [vmem:[%s2960_s7 + $0x20] sm:$0xff] }
 0x10f   : > { %2135 = vmatprep.subr.bf16.mxu1 %v2333_v63  ;;  %v2234_v39 = vpack.c.bf16 %v1326_v38, %v1325_v37 }
 0x111   : > { %1775 = vmatmul.mubr.msk.f32.vlgmr.msra.gmra.mrb[2].mxu1 %vm704_vm5, %v1772_v42  ;;  %v2237_v42 = vpack.c.bf16 %v1328_v41, %v1327_v40  ;;  %v1828_v40 = vld [vmem:[%s2960_s7 + $0x68] sm:$0xff] }
 0x112   : > { %2137 = vmatpush1.bf16.msra.mxu1 %v2136_v43  ;;  %v1329_v43 = vld [vmem:[%s2960_s7 + $0x40] sm:$0xff] }
 0x113   : > { %2138 = vmatprep.subr.bf16.mxu1 %v2333_v63  ;;  %v2240_v45 = vpack.c.bf16 %v1330_v44, %v1329_v43  ;;  %v1830_v43 = vld [vmem:[%s2960_s7 + $0x78] sm:$0xff] }
 0x116   : > { %2140 = vmatpush1.bf16.msra.mxu1 %v2139_v46  ;;  %v1801_v46 = vld [vmem:[%s2958_s5 + $0x48] sm:$0xff] }
 0x117   : > { %2141 = vmatprep.subr.bf16.mxu1 %v2333_v63  ;;  %v2204_v50 = vpack.c.bf16 %v1802_v47, %v1801_v46  ;;  %v1832_v46 = vld [vmem:[%s2960_s7 + $0x88] sm:$0xff] }
 0x11a   : > { %2143 = vmatpush1.bf16.msra.mxu1 %v2142_v49 }
 0x11b   : > { %2144 = vmatprep.subr.bf16.mxu1 %v2333_v63 }
 0x11e   : > { %2146 = vmatpush1.bf16.msra.mxu1 %v2145_v52 }
 0x11f   : > { %2147 = vmatprep.subr.bf16.mxu1 %v2333_v63 }
 0x122   : > { %2149 = vmatpush1.bf16.msra.mxu1 %v2148_v55  ;;  %v1804_v55 = vld [vmem:[%s2958_s5 + $0x60] sm:$0xff] }
 0x123   : > { %2150 = vmatprep.subr.bf16.mxu1 %v2333_v63  ;;  %v2207_v56 = vpack.c.bf16 %v1804_v55, %v1803_v54  ;;  %v1838_v55 = vld [vmem:[%s2960_s7 + $0xb0] sm:$0xff] }
 0x126   : > { %2152 = vmatpush1.bf16.msra.mxu1 %v2151_v58  ;;  %v1806_v58 = vld [vmem:[%s2958_s5 + $0x70] sm:$0xff] }
 0x127   : > { %2153 = vmatprep.subr.bf16.mxu1 %v2333_v63  ;;  %v2210_v59 = vpack.c.bf16 %v1806_v58, %v1805_v57  ;;  %v1840_v58 = vld [vmem:[%s2960_s7 + $0xc0] sm:$0xff] }
 0x12a   : > { %2155 = vmatpush1.bf16.msra.mxu1 %v2154_v61  ;;  %v1808_v61 = vld [vmem:[%s2958_s5 + $0x80] sm:$0xff] }
 0x12b   : > { %2156 = vmatprep.subr.bf16.mxu1 %v2333_v63  ;;  %v2213_v62 = vpack.c.bf16 %v1808_v61, %v1807_v60  ;;  %v1842_v61 = vld [vmem:[%s2960_s7 + $0xd0] sm:$0xff] }
 0x12e   : > { %2158 = vmatpush1.bf16.msra.mxu1 %v2157_v2  ;;  %v1809_v2 = vld [vmem:[%s2958_s5 + $0x88] sm:$0x3f] }
 0x12f   : > { %2159 = vmatprep.subr.bf16.mxu1 %v2333_v63 }
 0x132   : > { %2162 = vmatpush1.bf16.msk.msra.mxu1 %vm2161_vm7, %v2160_v9  ;;  %v1816_v9 = vld [vmem:[%s2958_s5 + $0xb0] sm:$0xff] }
 0x133   : > { %2191 = vmatprep.subr.bf16.mxu1 %v2333_v63  ;;  %v2222_v11 = vpack.c.bf16 %v1817_v10, %v1816_v9 }
 0x1e0   : > { %v780_v12 = vpop.f32.mrb[0].mxu1 }
 0x1e1   : > { %v782_v13 = vpop.f32.mrb[1].mxu1 }
 0x1e4   : > { %v856_v16 = vpop.f32.mrb[2].mxu1 }
 0x1e5   : > { %v861_v17 = vmax.f32 %v780_v12, %v856_v16  ;;  %v858_v18 = vpop.f32.mrb[3].mxu1  ;;  %v1818_v12 = vld [vmem:[%s2958_s5 + $0xc0] sm:$0xff] }
 0x1e6   : > { %v862_v19 = vmax.f32 %v782_v13, %v858_v18  ;;  %v1819_v13 = vld [vmem:[%s2958_s5 + $0xc8] sm:$0xff] }
 0x1e7   : > { %v2225_v14 = vpack.c.bf16 %v1819_v13, %v1818_v12  ;;  %v1584_v18 = vld [vmem:[%s2962_s9 + $0x8] sm:$0xff] }
 0x1e8   : > { %1777 = vmatprep.mubr.msk.f32.mxu1 %vm881_vm8, %v862_v19  ;;  %1797 = vmatprep.mubr.msk.f32.mxu0 %vm881_vm8, %v862_v19  ;;  %v1585_v19 = vld [vmem:[%s2962_s9 + $0x10] sm:$0xff] }
 0x1e9   : > { %954 = vmatmul.mubr.f32.vlgmr.msra.gmra.mrb[4].mxu1 %v861_v17  ;;  %1046 = vmatmul.mubr.f32.vlgmr.msra.gmra.mrb[4].mxu0 %v861_v17  ;;  %v1583_v17 = vld [vmem:[%s2962_s9] sm:$0xff]  ;;  %v2276_v22 = vpack.c.bf16 %v1586_v21, %v1585_v19 }
 0x1ea   : > { %2193 = vmatpush3.bf16.msra.mxu1 %v2192_v20  ;;  %1946 = vmatprep.mubr.msk.f32.mxu1 %vm2335_vm9, %v2332_v7  ;;  %v2273_v20 = vpack.c.bf16 %v1584_v18, %v1583_v17 }
 0x1eb   : > { %2194 = vmatprep.subr.bf16.mxu1 %v2333_v63  ;;  %2011 = vmatprep.mubr.msk.f32.mxu0 %vm2335_vm9, %v2332_v7 }
 0x1ec   : > { %2229 = vmatpush3.bf16.msra.mxu0 %v2228_v34  ;;  %v1800_v34 = vld [vmem:[%s2959_s6] ss:$0 sm:$0xff] }
 0x1ed   : > { %2230 = vmatprep.subr.bf16.mxu0 %v2333_v63 }
 0x1ee   : > { %2196 = vmatpush3.bf16.msra.mxu1 %v2195_v23  ;;  %v1587_v23 = vld [vmem:[%s2962_s9 + $0x20] sm:$0xff] }
 0x1ef   : > { %2197 = vmatprep.subr.bf16.mxu1 %v2333_v63  ;;  %v2279_v25 = vpack.c.bf16 %v1588_v24, %v1587_v23 }
 0x1f0   : > { %2232 = vmatpush3.bf16.msra.mxu0 %v2231_v36  ;;  %v2243_v36 = vpack.c.bf16 %v1826_v33, %v1825_v32 }
 0x1f1   : > { %2233 = vmatprep.subr.bf16.mxu0 %v2333_v63 }
 0x1f2   : > { %2199 = vmatpush3.bf16.msra.mxu1 %v2198_v26  ;;  %v1589_v26 = vld [vmem:[%s2962_s9 + $0x30] sm:$0xff] }
 0x1f3   : > { %2200 = vmatprep.subr.bf16.mxu1 %v2333_v63  ;;  %v2282_v28 = vpack.c.bf16 %v1590_v27, %v1589_v26 }
 0x1f4   : > { %2235 = vmatpush3.bf16.msra.mxu0 %v2234_v39  ;;  %v1827_v39 = vld [vmem:[%s2960_s7 + $0x60] sm:$0xff] }
 0x1f5   : > { %2236 = vmatprep.subr.bf16.mxu0 %v2333_v63  ;;  %v2246_v41 = vpack.c.bf16 %v1828_v40, %v1827_v39 }
 0x1f6   : > { %2202 = vmatpush3.bf16.msra.mxu1 %v2201_v29  ;;  %v1591_v29 = vld [vmem:[%s2962_s9 + $0x40] sm:$0xff] }
 0x1f7   : > { %1944 = vmatprep.subr.mxu1 %v2332_v7 }
 0x1f8   : > { %2238 = vmatpush3.bf16.msra.mxu0 %v2237_v42  ;;  %v1829_v42 = vld [vmem:[%s2960_s7 + $0x70] sm:$0xff] }
 0x1f9   : > { %2239 = vmatprep.subr.bf16.mxu0 %v2333_v63  ;;  %v2249_v44 = vpack.c.bf16 %v1830_v43, %v1829_v42 }
 0x1fa   : > { %1945 = vmatpush3.msk.msra.mxu1 %vm614_vm2, %v1061_v30  ;;  %v1592_v30 = vld [vmem:[%s2962_s9 + $0x48] sm:$0xff] }
 0x1fb   : > { %2203 = vmatprep.subr.bf16.mxu1 %v2333_v63  ;;  %v2285_v31 = vpack.c.bf16 %v1592_v30, %v1591_v29 }
 0x1fc   : > { %2241 = vmatpush3.bf16.msra.mxu0 %v2240_v45  ;;  %v1831_v45 = vld [vmem:[%s2960_s7 + $0x80] sm:$0xff] }
 0x1fd   : > { %2242 = vmatprep.subr.bf16.mxu0 %v2333_v63  ;;  %v2252_v47 = vpack.c.bf16 %v1832_v46, %v1831_v45 }
 0x2bc   : > { %v955_v48 = vpop.f32.mrb[4].mxu1  ;;  %v1047_v49 = vpop.f32.mrb[4].mxu0 }
 0x2bd   : > { %v1051_v51 = vmax.f32 %v955_v48, %v1047_v49  ;;  %v957_v52 = vpop.f32.mrb[5].mxu1  ;;  %v1049_v53 = vpop.f32.mrb[5].mxu0  ;;  %v1833_v48 = vld [vmem:[%s2960_s7 + $0x90] sm:$0xff]  ;;  %v1834_v49 = vld [vmem:[%s2960_s7 + $0x98] sm:$0xff] }
 0x2be   : > { %v1837_v52 = vld [vmem:[%s2960_s7 + $0xa8] sm:$0xff] }
 0x2bf   : > { %1947 = vmatmul.mubr.msk.f32.vlgmr.msra.gmra.mrb[6].mxu1 %vm1062_vm10, %v1051_v51  ;;  %v1156_v4 = vrot.slane %v1051_v51, 1  ;;  %v1243_v16 = vrot.slane %v1051_v51, 2  ;;  %v1836_v51 = vld [vmem:[%s2960_s7 + $0xa0] sm:$0xff] }
 0x2c0   : > { %2205 = vmatpush3.bf16.msra.mxu1 %v2204_v50  ;;  %1967 = vmatprep.mubr.msk.f32.mxu1 %vm2335_vm9, %v2332_v7  ;;  %v2255_v50 = vpack.c.bf16 %v1834_v49, %v1833_v48  ;;  %v2258_v53 = vpack.c.bf16 %v1837_v52, %v1836_v51 }
 0x2c1   : > { %2206 = vmatprep.subr.bf16.mxu1 %v2333_v63 }
 0x2c4   : > { %2208 = vmatpush3.bf16.msra.mxu1 %v2207_v56  ;;  %v1839_v56 = vld [vmem:[%s2960_s7 + $0xb8] sm:$0xff] }
 0x2c5   : > { %2209 = vmatprep.subr.bf16.mxu1 %v2333_v63  ;;  %v2261_v57 = vpack.c.bf16 %v1839_v56, %v1838_v55 }
 0x2c8   : > { %2211 = vmatpush3.bf16.msra.mxu1 %v2210_v59  ;;  %v1841_v59 = vld [vmem:[%s2960_s7 + $0xc8] sm:$0xff] }
 0x2c9   : > { %2212 = vmatprep.subr.bf16.mxu1 %v2333_v63  ;;  %v2264_v60 = vpack.c.bf16 %v1841_v59, %v1840_v58 }
 0x2cc   : > { %2214 = vmatpush3.bf16.msra.mxu1 %v2213_v62 }
 0x2cd   : > { %1965 = vmatprep.subr.mxu1 %v2332_v7 }
 0x2d0   : > { %1966 = vmatpush3.msk.msra.mxu1 %vm614_vm2, %v1809_v2  ;;  %v2270_v2 = vpack.c.bf16 %v1845_v1, %v1844_v0 }
 0x2d1   : > { %1968 = vmatmul.mubr.msk.f32.vlgmr.msra.gmra.mrb[6].mxu1 %vm1062_vm10, %v1156_v4  ;;  %2215 = vmatprep.subr.bf16.mxu1 %v2333_v63  ;;  %v1593_v4 = vld [vmem:[%s2962_s9 + $0x50] sm:$0xff] }
 0x2d2   : > { %2217 = vmatpush3.bf16.msra.mxu1 %v2216_v3  ;;  %1988 = vmatprep.mubr.msk.f32.mxu1 %vm2335_vm9, %v2332_v7  ;;  %v2288_v6 = vpack.c.bf16 %v1594_v5, %v1593_v4 }
 0x2d3   : > { %2218 = vmatprep.subr.bf16.mxu1 %v2333_v63 }
 0x2d6   : > { %2220 = vmatpush3.bf16.msra.mxu1 %v2219_v8  ;;  %v1824_v8 = vld [vmem:[%s2961_s8] ss:$0 sm:$0xff] }
 0x2d7   : > { %2221 = vmatprep.subr.bf16.mxu1 %v2333_v63 }
 0x2da   : > { %2223 = vmatpush3.bf16.msra.mxu1 %v2222_v11  ;;  %v1848_v11 = vld [vmem:[%s2963_s10] ss:$0 sm:$0xff] }
 0x2db   : > { %2224 = vmatprep.subr.bf16.mxu1 %v2333_v63 }
 0x2de   : > { %2226 = vmatpush3.bf16.msra.mxu1 %v2225_v14 }
 0x2df   : > { %1986 = vmatprep.subr.mxu1 %v2332_v7 }
 0x2e2   : > { %1987 = vmatpush3.msk.msra.mxu1 %vm614_vm2, %v1820_v15 }
 0x2e3   : > { %1989 = vmatmul.mubr.msk.f32.vlgmr.msra.gmra.mrb[6].mxu1 %vm1062_vm10, %v1243_v16  ;;  %2272 = vmatprep.subr.bf16.mxu1 %v2333_v63 }
 0x2e4   : > { %2084 = vmatprep.mubr.msk.f32.mxu1 %vm2335_vm9, %v2332_v7  ;;  %2274 = vmatpush3.bf16.msra.mxu1 %v2273_v20 }
 0x2e5   : > { %2275 = vmatprep.subr.bf16.mxu1 %v2333_v63 }
 0x2e8   : > { %2277 = vmatpush3.bf16.msra.mxu1 %v2276_v22 }
 0x2e9   : > { %2278 = vmatprep.subr.bf16.mxu1 %v2333_v63 }
 0x2ec   : > { %2280 = vmatpush3.bf16.msra.mxu1 %v2279_v25 }
 0x2ed   : > { %2281 = vmatprep.subr.bf16.mxu1 %v2333_v63 }
 0x2f0   : > { %2283 = vmatpush3.bf16.msra.mxu1 %v2282_v28 }
 0x2f1   : > { %2284 = vmatprep.subr.bf16.mxu1 %v2333_v63 }
 0x2f4   : > { %2286 = vmatpush3.bf16.msra.mxu1 %v2285_v31 }
 0x2f5   : > { %2287 = vmatprep.subr.bf16.mxu1 %v2333_v63 }
 0x2f8   : > { %2289 = vmatpush3.bf16.msra.mxu1 %v2288_v6 }
 0x3b6   : > { %v1315_v35 = vpop.f32.mrb[6].mxu1 }
 0x3b7   : > { %v2294_v37 = vadd.f32 %v1800_v34, %v1315_v35  ;;  %v1990_v38 = vpop.f32.mrb[7].mxu1 }
 0x3b9   : > { %2012 = vmatmul.mubr.msk.f32.vlgmr.msra.gmra.mrb[6].mxu0 %vm1331_vm11, %v2294_v37  ;;  %v1423_v54 = vrot.slane %v2294_v37, 1  ;;  %v1508_v3 = vrot.slane %v2294_v37, 2 }
 0x3ba   : > { %2244 = vmatpush3.bf16.msra.mxu0 %v2243_v36  ;;  %2034 = vmatprep.mubr.msk.f32.mxu0 %vm2335_vm9, %v2332_v7 }
 0x3bb   : > { %2245 = vmatprep.subr.bf16.mxu0 %v2333_v63 }
 0x3be   : > { %2247 = vmatpush3.bf16.msra.mxu0 %v2246_v41 }
 0x3bf   : > { %2248 = vmatprep.subr.bf16.mxu0 %v2333_v63 }
 0x3c2   : > { %2250 = vmatpush3.bf16.msra.mxu0 %v2249_v44 }
 0x3c3   : > { %2251 = vmatprep.subr.bf16.mxu0 %v2333_v63 }
 0x3c6   : > { %2253 = vmatpush3.bf16.msra.mxu0 %v2252_v47 }
 0x3c7   : > { %2254 = vmatprep.subr.bf16.mxu0 %v2333_v63 }
 0x3ca   : > { %2256 = vmatpush3.bf16.msra.mxu0 %v2255_v50 }
 0x3cb   : > { %2257 = vmatprep.subr.bf16.mxu0 %v2333_v63 }
 0x3cd   : > { %2035 = vmatmul.mubr.msk.f32.vlgmr.msra.gmra.mrb[6].mxu0 %vm1331_vm11, %v1423_v54 }
 0x3ce   : > { %2259 = vmatpush3.bf16.msra.mxu0 %v2258_v53  ;;  %2057 = vmatprep.mubr.msk.f32.mxu0 %vm2335_vm9, %v2332_v7  ;;  %v1843_v7 = vld [vmem:[%s2960_s7 + $0xd8] sm:$0xff] }
 0x3cf   : > { %2260 = vmatprep.subr.bf16.mxu0 %v2333_v63  ;;  %v2267_v62 = vpack.c.bf16 %v1843_v7, %v1842_v61 }
 0x3d2   : > { %2262 = vmatpush3.bf16.msra.mxu0 %v2261_v57 }
 0x3d3   : > { %2263 = vmatprep.subr.bf16.mxu0 %v2333_v63 }
 0x3d6   : > { %2265 = vmatpush3.bf16.msra.mxu0 %v2264_v60 }
 0x3d7   : > { %2266 = vmatprep.subr.bf16.mxu0 %v2333_v63 }
 0x3da   : > { %2268 = vmatpush3.bf16.msra.mxu0 %v2267_v62 }
 0x3db   : > { %2269 = vmatprep.subr.bf16.mxu0 %v2333_v63 }
 0x3de   : > { %2271 = vmatpush3.bf16.msra.mxu0 %v2270_v2 }
 0x3e1   : > { %2058 = vmatmul.mubr.msk.f32.vlgmr.msra.gmra.mrb[6].mxu0 %vm1331_vm11, %v1508_v3 }
 0x4b4   : > { %v1577_v9 = vpop.f32.mrb[6].mxu0 }
 0x4b5   : > { %v2295_v63 = vadd.f32 %v1824_v8, %v1577_v9  ;;  %v2059_v10 = vpop.f32.mrb[7].mxu0 }
 0x4b7   : > { %2085 = vmatmul.mubr.msk.f32.vlgmr.msra.gmra.mrb[8].mxu1 %vm1595_vm12, %v2295_v63 }
 0x58a   : > { %v1665_v12 = vpop.f32.mrb[8].mxu1 }
 0x58b   : > { %v1675_v13 = vadd.f32 %v1848_v11, %v1665_v12  ;;  %v2086_v14 = vpop.f32.mrb[9].mxu1 }
 0x58d   : > { %1677 = vst.msk [vmem:[%s384_s12] sm:$0x7] %vm1676_vm13, %v1675_v13 }
 0x58e PF: > { %s21_s17 = sadd.s32 1, %s2330_s17  }
 0x58f   : > { %p18_p4 = scmp.ge.s32.totalorder %s21_s17, 4  }
 0x591   :  { %20 = sbr.rel (!%p18_p4) target bundleno = 1 (0x1), region = 102 }

</bundles_post_ra>
